<compile_context>
chip_gen: v7x
topology: tpu7x:2x2x1
jax: 0.10.0
libtpu: 0.0.40
codegen_flags: <defaults>
</compile_context>

<pallas_src>
import functools

import jax
import jax.numpy as jnp
import numpy as np
from jax.experimental import pallas as pl
from jax.experimental.pallas import tpu as pltpu


def _ceil_to(x, m):
    return ((x + m - 1) // m) * m


# ----------------------------------------------------------------------------
# Kernel
# ----------------------------------------------------------------------------
def _emovae_kernel(S, L, E, D, H,
                   x_ref, eps_ref, p_ref,
                   wa_ref, w3_ref, exps_ref, wpe_ref, bias_ref,
                   out_ref):
    SL = S * L
    SE = S * E
    TWO_SL = 2 * SL
    Hpad = _ceil_to(H, 128)
    TWOSLpad = _ceil_to(TWO_SL, 128)
    SLpad = _ceil_to(SL, 128)
    SEpad = _ceil_to(SE, 128)
    TAIL_OFF = TWOSLpad

    x = x_ref[...]                                               # (TB, H)

    # h1 = relu(hidden_prior @ W_h + b_h)
    h1 = jnp.dot(x, wa_ref[:, :H],
                 preferred_element_type=jnp.float32) + bias_ref[:, :H]
    h1 = jnp.maximum(h1, 0.0)

    # All mu / logvar heads in one lane-dense matmul (latent-major lanes).
    heads = (jnp.dot(h1, wa_ref[:, Hpad:Hpad + TWO_SL],
                     preferred_element_type=jnp.float32)
             + bias_ref[:, Hpad:Hpad + TWO_SL])                  # (TB, 2*SL)
    out_ref[:, :TWO_SL] = heads                                  # aligned 128-lane store

    mu = heads[:, :SL]
    lv = heads[:, SL:TWO_SL]

    # Reparameterize all strategies at once.
    z = mu + eps_ref[...] * jnp.exp(0.5 * lv)                    # (TB, SL)

    p = p_ref[...]                                               # (TB, S)

    # Dense_z_priors for all strategies via one permuted block-diagonal matmul.
    logits = (jnp.dot(z, w3_ref[:, :SE],
                      preferred_element_type=jnp.float32)
              + bias_ref[:, Hpad + TWOSLpad:Hpad + TWOSLpad + SE])   # (TB, SE)

    # Per-strategy softmax with a single full-width exp.
    maxs = jnp.concatenate(
        [jnp.max(logits[:, s * E:(s + 1) * E], axis=-1, keepdims=True)
         for s in range(S)], axis=-1)                            # (TB, S)
    expand_E = exps_ref[:, SLpad:SLpad + SE]                     # (S, SE) 0/1
    e = jnp.exp(logits - jnp.dot(maxs, expand_E,
                                 preferred_element_type=jnp.float32))
    sums = jnp.concatenate(
        [jnp.sum(e[:, s * E:(s + 1) * E], axis=-1, keepdims=True)
         for s in range(S)], axis=-1)                            # (TB, S)
    # p_strat-weighted, per-strategy-normalised probabilities in one shot:
    # pw[:, s*E+e] = p_s * softmax_s(logits)_e
    pw = e * jnp.dot(p / sums, expand_E, preferred_element_type=jnp.float32)

    # z_out = sum_s p_s * z_s : expand p over latent lanes, gather strategies.
    pL = jnp.dot(p, exps_ref[:, :SL], preferred_element_type=jnp.float32)
    z_out = jnp.dot(z * pL, w3_ref[:, SEpad:SEpad + L],
                    preferred_element_type=jnp.float32)          # (TB, L)

    # [emo_out_prob | emo_out_emb] = pw @ [gather_E | tiled emotion embedding]
    combo = jnp.dot(pw, wpe_ref[...], preferred_element_type=jnp.float32)
    ep = combo[:, :E]                                            # (TB, E)
    emo = combo[:, E:E + D]                                      # (TB, D)

    out_ref[:, TAIL_OFF:TAIL_OFF + L] = z_out
    out_ref[:, TAIL_OFF + L:TAIL_OFF + L + E] = jnp.log(ep)
    out_ref[:, TAIL_OFF + L + E:TAIL_OFF + L + E + D] = emo

    # Deterministic zero fill of unused pad lanes.
    tb, out_w = out_ref.shape
    if TAIL_OFF > TWO_SL:
        out_ref[:, TWO_SL:TAIL_OFF] = jnp.zeros((tb, TAIL_OFF - TWO_SL), jnp.float32)
    tail_used = TAIL_OFF + L + E + D
    if out_w > tail_used:
        out_ref[:, tail_used:] = jnp.zeros((tb, out_w - tail_used), jnp.float32)


# ----------------------------------------------------------------------------
# One-time parameter packing (layout plumbing, done once with the parameters)
# ----------------------------------------------------------------------------
def pack_params(params, S, L, E, D, H):
    SL, SE, TWO_SL = S * L, S * E, 2 * S * L
    Hpad = _ceil_to(H, 128)
    TWOSLpad = _ceil_to(TWO_SL, 128)
    SLpad = _ceil_to(SL, 128)
    SEpad = _ceil_to(SE, 128)
    f32 = jnp.float32

    # mu / logvar heads, latent-major lanes (column l*S + s).
    w_mu_lm = jnp.transpose(params["W_mu"], (1, 2, 0)).reshape(H, SL)
    w_lv_lm = jnp.transpose(params["W_lv"], (1, 2, 0)).reshape(H, SL)
    w_heads = jnp.concatenate([w_mu_lm, w_lv_lm], axis=1)        # (H, 2SL)
    wa = jnp.zeros((H, Hpad + TWO_SL), f32)
    wa = wa.at[:, :H].set(params["W_h"].astype(f32))
    wa = wa.at[:, Hpad:].set(w_heads.astype(f32))

    # Permuted block-diagonal Dense_z weight (rows latent-major) + gather_L.
    eyeS = jnp.eye(S, dtype=f32)
    w_dz_full = eyeS[:, None, :, None] * params["W_dz"][:, :, None, :]   # (S,L,S,E)
    w_dz_lm = jnp.transpose(w_dz_full, (1, 0, 2, 3)).reshape(SL, SE)
    gather_L = jnp.repeat(jnp.eye(L, dtype=f32), S, axis=0)               # (SL, L)
    w3 = jnp.zeros((SL, SEpad + L), f32)
    w3 = w3.at[:, :SE].set(w_dz_lm.astype(f32))
    w3 = w3.at[:, SEpad:].set(gather_L)

    # 0/1 expansion matrices for p_strat / softmax-max broadcasts.
    expand_L = jnp.tile(eyeS, (1, L))                    # (S, SL) latent-major
    expand_E = jnp.repeat(eyeS, E, axis=1)               # (S, SE) strategy-major
    exps = jnp.zeros((S, SLpad + SE), f32)
    exps = exps.at[:, :SL].set(expand_L)
    exps = exps.at[:, SLpad:].set(expand_E)

    # [gather_E | tiled emotion embedding]: pw @ wpe -> [emo prob | emo emb].
    gather_E = jnp.tile(jnp.eye(E, dtype=f32), (S, 1))   # (SE, E)
    emb_tiled = jnp.tile(params["emb"].astype(f32), (S, 1))  # (SE, D)
    wpe = jnp.concatenate([gather_E, emb_tiled], axis=1)      # (SE, E+D)

    # Lane-aligned bias slab: [b_h | pad | b_mu,b_lv | pad | b_dz].
    b_mu_lm = jnp.transpose(params["b_mu"], (1, 2, 0)).reshape(1, SL)
    b_lv_lm = jnp.transpose(params["b_lv"], (1, 2, 0)).reshape(1, SL)
    bias = jnp.zeros((1, Hpad + TWOSLpad + SE), f32)
    bias = bias.at[:, :H].set(params["b_h"].astype(f32))
    bias = bias.at[:, Hpad:Hpad + SL].set(b_mu_lm.astype(f32))
    bias = bias.at[:, Hpad + SL:Hpad + TWO_SL].set(b_lv_lm.astype(f32))
    bias = bias.at[:, Hpad + TWOSLpad:].set(params["b_dz"].reshape(1, SE).astype(f32))

    return {"wa": wa, "w3": w3, "exps": exps, "wpe": wpe, "bias": bias,
            "dims": (S, L, E, D, H)}


# ----------------------------------------------------------------------------
# Forward wrapper
# ----------------------------------------------------------------------------
def emo_trans_vae_forward(hidden_prior, p_strat, eps, packed):
    """Pallas implementation of EmoTransVAE_MultiStrat.forward (prior path).

    Returns (emo_out_emb, mus, logvars, emo_out_prob, z_out) matching PyTorch.
    """
    S, L, E, D, H = packed["dims"]
    B = hidden_prior.shape[0]
    SL = S * L
    TWO_SL = 2 * SL
    TAIL_OFF = _ceil_to(TWO_SL, 128)
    OUT_W = TAIL_OFF + _ceil_to(L + E + D, 128)

    # Batch tiling: at least one full sublane group per tile, cap tiles at 256 rows.
    TB = min(_ceil_to(B, 8), 256)
    B_pad = _ceil_to(B, TB)
    nb = B_pad // TB

    # eps in latent-major lane layout, matching the heads packing.
    # TODO(synk): torch draws eps in-module via randn_like; here it is an input
    # (could instead be generated in-kernel with pltpu.prng_* for full fusion).
    eps_lm = jnp.transpose(eps, (1, 2, 0)).reshape(B, SL)

    def pad_rows(a):
        a = a.astype(jnp.float32)
        return a if B_pad == B else jnp.pad(a, ((0, B_pad - B), (0, 0)))

    x = pad_rows(hidden_prior)
    eps_p = pad_rows(eps_lm)
    p_p = pad_rows(p_strat)

    kernel = functools.partial(_emovae_kernel, S, L, E, D, H)

    def row_spec(w):
        return pl.BlockSpec((TB, w), lambda i: (i, 0))

    def full_spec(a):
        return pl.BlockSpec(a.shape, lambda i: (0, 0))

    out = pl.pallas_call(
        kernel,
        out_shape=jax.ShapeDtypeStruct((B_pad, OUT_W), jnp.float32),
        grid_spec=pltpu.PrefetchScalarGridSpec(
            num_scalar_prefetch=0,
            grid=(nb,),
            in_specs=[
                row_spec(H),                     # hidden_prior tile
                row_spec(SL),                    # eps tile (latent-major)
                row_spec(S),                     # p_strat tile (un-expanded)
                full_spec(packed["wa"]),         # [W_h | pad | mu/logvar heads]
                full_spec(packed["w3"]),         # [Dense_z block | pad | gather_L]
                full_spec(packed["exps"]),       # [expand_L | pad | expand_E]
                full_spec(packed["wpe"]),        # [gather_E | tiled emb]
                full_spec(packed["bias"]),       # packed biases
            ],
            out_specs=pl.BlockSpec((TB, OUT_W), lambda i: (i, 0)),
        ),
        compiler_params=pltpu.CompilerParams(
            dimension_semantics=("parallel",)),
    )(x, eps_p, p_p,
      packed["wa"], packed["w3"], packed["exps"], packed["wpe"], packed["bias"])

    heads = out[:B, :TWO_SL]
    mus = heads[:, :SL].reshape(B, L, S)                 # latent-major -> no transpose
    logvars = heads[:, SL:TWO_SL].reshape(B, L, S)
    z_out = out[:B, TAIL_OFF:TAIL_OFF + L]
    emo_log_prob = out[:B, TAIL_OFF + L:TAIL_OFF + L + E]
    emo_out_emb = out[:B, TAIL_OFF + L + E:TAIL_OFF + L + E + D].reshape(B, 1, D)
    return emo_out_emb, mus, logvars, emo_log_prob, z_out


# ----------------------------------------------------------------------------
# Pure-JAX reference (for validation)
# ----------------------------------------------------------------------------
def _reference(hidden_prior, p_strat, eps, params):
    h1 = jax.nn.relu(hidden_prior @ params["W_h"] + params["b_h"])
    mu_s = jnp.einsum("bh,shl->sbl", h1, params["W_mu"]) + params["b_mu"]
    lv_s = jnp.einsum("bh,shl->sbl", h1, params["W_lv"]) + params["b_lv"]
    z_s = mu_s + eps * jnp.exp(0.5 * lv_s)
    logits = jnp.einsum("sbl,sle->sbe", z_s, params["W_dz"]) + params["b_dz"]
    prob = jax.nn.softmax(logits, axis=-1)
    w = jnp.transpose(p_strat, (1, 0))[:, :, None]          # (S, B, 1)
    z_out = jnp.sum(z_s * w, axis=0)
    ep = jnp.sum(prob * w, axis=0)
    emo_out_emb = (ep @ params["emb"]).reshape(hidden_prior.shape[0], 1, -1)
    return (emo_out_emb, jnp.transpose(mu_s, (1, 2, 0)),
            jnp.transpose(lv_s, (1, 2, 0)), jnp.log(ep), z_out)


def _init_params(key, H, L, E, D, S):
    ks = jax.random.split(key, 12)
    s = 0.05
    return {
        "W_h":  jax.random.normal(ks[0], (H, H), jnp.float32) * s,
        "b_h":  jax.random.normal(ks[1], (1, H), jnp.float32) * s,
        "W_mu": jax.random.normal(ks[2], (S, H, L), jnp.float32) * s,
        "b_mu": jax.random.normal(ks[3], (S, 1, L), jnp.float32) * s,
        "W_lv": jax.random.normal(ks[4], (S, H, L), jnp.float32) * s,
        "b_lv": jax.random.normal(ks[5], (S, 1, L), jnp.float32) * s,
        "W_dz": jax.random.normal(ks[6], (S, L, E), jnp.float32) * s,
        "b_dz": jax.random.normal(ks[7], (S, 1, E), jnp.float32) * s,
        "emb":  jax.random.normal(ks[8], (E, D), jnp.float32) * s,
    }


if __name__ == "__main__":
    # Small, module-consistent shapes.
    B = 2            # batch
    d_model = 32     # config.d_model (sample_strat_emb / emo_use_cat_attn False)
    H = d_model      # hidden_dim_prior
    L = 16           # config.latent_dim
    n_emo_in = 8
    E = 8            # n_emo_out
    S = 4            # n_strat
    D = 24           # embed_dim

    key = jax.random.PRNGKey(0)
    k_par, k_hid, k_emo, k_str, k_eps = jax.random.split(key, 5)

    params = _init_params(k_par, H, L, E, D, S)
    hidden_prior = jax.random.normal(k_hid, (B, H), jnp.float32)
    p_emo_in = jax.nn.softmax(jax.random.normal(k_emo, (B, n_emo_in), jnp.float32), -1)
    p_strat = jax.nn.softmax(jax.random.normal(k_str, (B, S), jnp.float32), -1)
    # Reparameterization noise (torch.randn_like equivalent), drawn once so the
    # kernel and the reference are comparable.
    eps = jax.random.normal(k_eps, (S, B, L), jnp.float32)

    packed = pack_params(params, S, L, E, D, H)     # one-time weight packing

    outs = emo_trans_vae_forward(hidden_prior, p_strat, eps, packed)
    outs = jax.block_until_ready(outs)

    refs = _reference(hidden_prior, p_strat, eps, params)
    for o, r in zip(outs, refs):
        np.testing.assert_allclose(np.asarray(o), np.asarray(r),
                                   rtol=1e-3, atol=1e-3)

    print("KERNEL_OK")
</pallas_src>

<mosaic_0001>
module attributes {stable_mosaic.version = 11 : i64} {
  func.func @_emovae_kernel(%arg0: i32, %arg1: memref<8x32xf32, #tpu.memory_space<vmem>>, %arg2: memref<8x64xf32, #tpu.memory_space<vmem>>, %arg3: memref<8x4xf32, #tpu.memory_space<vmem>>, %arg4: memref<32x256xf32, #tpu.memory_space<vmem>>, %arg5: memref<64x144xf32, #tpu.memory_space<vmem>>, %arg6: memref<4x160xf32, #tpu.memory_space<vmem>>, %arg7: memref<32x32xf32, #tpu.memory_space<vmem>>, %arg8: memref<1x288xf32, #tpu.memory_space<vmem>>, %arg9: memref<8x256xf32, #tpu.memory_space<vmem>>) attributes {dimension_semantics = [#tpu.dimension_semantics<parallel>], iteration_bounds = array<i64: 1>, scalar_prefetch = 0 : i64, scratch_operands = 0 : i64, tpu.core_type = #tpu.core_type<tc>, window_params = [{transform_indices = @transform_0, window_bounds = array<i64: 8, 32>}, {transform_indices = @transform_1, window_bounds = array<i64: 8, 64>}, {transform_indices = @transform_2, window_bounds = array<i64: 8, 4>}, {pipeline_mode = #tpu.pipeline_mode<synchronous>, transform_indices = @transform_3, window_bounds = array<i64: 32, 256>}, {pipeline_mode = #tpu.pipeline_mode<synchronous>, transform_indices = @transform_4, window_bounds = array<i64: 64, 144>}, {pipeline_mode = #tpu.pipeline_mode<synchronous>, transform_indices = @transform_5, window_bounds = array<i64: 4, 160>}, {pipeline_mode = #tpu.pipeline_mode<synchronous>, transform_indices = @transform_6, window_bounds = array<i64: 32, 32>}, {pipeline_mode = #tpu.pipeline_mode<synchronous>, transform_indices = @transform_7, window_bounds = array<i64: 1, 288>}, {transform_indices = @transform_8, window_bounds = array<i64: 8, 256>}]} {
    %c0 = arith.constant 0 : index
    %c0_0 = arith.constant 0 : index
    %0 = vector.load %arg1[%c0, %c0_0] : memref<8x32xf32, #tpu.memory_space<vmem>>, vector<8x32xf32>
    %c0_1 = arith.constant 0 : index
    %c0_2 = arith.constant 0 : index
    %1 = vector.load %arg4[%c0_1, %c0_2] : memref<32x256xf32, #tpu.memory_space<vmem>>, vector<32x32xf32>
    %cst = arith.constant dense<0.000000e+00> : vector<8x32xf32>
    %2 = tpu.matmul %0, %1, %cst {dimension_numbers = #tpu.dot_dimension_numbers<[1], [0], [0], [1], [0, 0, 1, 1], [], []>} : vector<8x32xf32>, vector<32x32xf32>, vector<8x32xf32> -> vector<8x32xf32>
    %c0_3 = arith.constant 0 : index
    %c0_4 = arith.constant 0 : index
    %3 = vector.load %arg8[%c0_3, %c0_4] : memref<1x288xf32, #tpu.memory_space<vmem>>, vector<1x32xf32>
    %4 = vector.broadcast %3 : vector<1x32xf32> to vector<8x32xf32>
    %5 = arith.addf %2, %4 : vector<8x32xf32>
    %cst_5 = arith.constant 0.000000e+00 : f32
    %6 = vector.broadcast %cst_5 : f32 to vector<8x32xf32>
    %7 = arith.maximumf %5, %6 : vector<8x32xf32>
    %c0_6 = arith.constant 0 : index
    %c128 = arith.constant 128 : index
    %8 = vector.load %arg4[%c0_6, %c128] : memref<32x256xf32, #tpu.memory_space<vmem>>, vector<32x128xf32>
    %cst_7 = arith.constant dense<0.000000e+00> : vector<8x128xf32>
    %9 = tpu.matmul %7, %8, %cst_7 {dimension_numbers = #tpu.dot_dimension_numbers<[1], [0], [0], [1], [0, 0, 1, 1], [], []>} : vector<8x32xf32>, vector<32x128xf32>, vector<8x128xf32> -> vector<8x128xf32>
    %c0_8 = arith.constant 0 : index
    %c128_9 = arith.constant 128 : index
    %10 = vector.load %arg8[%c0_8, %c128_9] : memref<1x288xf32, #tpu.memory_space<vmem>>, vector<1x128xf32>
    %11 = vector.broadcast %10 : vector<1x128xf32> to vector<8x128xf32>
    %12 = arith.addf %9, %11 : vector<8x128xf32>
    %c0_10 = arith.constant 0 : index
    %c0_11 = arith.constant 0 : index
    %13 = vector.load %arg9[%c0_10, %c0_11] : memref<8x256xf32, #tpu.memory_space<vmem>>, vector<8x128xf32>
    tpu.vector_store %arg9[%c0_10, %c0_11], %12 {strides = array<i32>} : memref<8x256xf32, #tpu.memory_space<vmem>>, vector<8x128xf32>,
    %14 = vector.extract_strided_slice %12 {offsets = [0, 0], sizes = [8, 64], strides = [1, 1]} : vector<8x128xf32> to vector<8x64xf32>
    %15 = vector.extract_strided_slice %12 {offsets = [0, 64], sizes = [8, 64], strides = [1, 1]} : vector<8x128xf32> to vector<8x64xf32>
    %c0_12 = arith.constant 0 : index
    %c0_13 = arith.constant 0 : index
    %16 = vector.load %arg2[%c0_12, %c0_13] : memref<8x64xf32, #tpu.memory_space<vmem>>, vector<8x64xf32>
    %cst_14 = arith.constant 5.000000e-01 : f32
    %17 = vector.broadcast %cst_14 : f32 to vector<8x64xf32>
    %18 = arith.mulf %17, %15 : vector<8x64xf32>
    %19 = math.exp %18 : vector<8x64xf32>
    %20 = arith.mulf %16, %19 : vector<8x64xf32>
    %21 = arith.addf %14, %20 : vector<8x64xf32>
    %c0_15 = arith.constant 0 : index
    %c0_16 = arith.constant 0 : index
    %22 = vector.load %arg3[%c0_15, %c0_16] : memref<8x4xf32, #tpu.memory_space<vmem>>, vector<8x4xf32>
    %c0_17 = arith.constant 0 : index
    %c0_18 = arith.constant 0 : index
    %23 = vector.load %arg5[%c0_17, %c0_18] : memref<64x144xf32, #tpu.memory_space<vmem>>, vector<64x32xf32>
    %cst_19 = arith.constant dense<0.000000e+00> : vector<8x32xf32>
    %24 = tpu.matmul %21, %23, %cst_19 {dimension_numbers = #tpu.dot_dimension_numbers<[1], [0], [0], [1], [0, 0, 1, 1], [], []>} : vector<8x64xf32>, vector<64x32xf32>, vector<8x32xf32> -> vector<8x32xf32>
    %c0_20 = arith.constant 0 : index
    %c256 = arith.constant 256 : index
    %25 = vector.load %arg8[%c0_20, %c256] : memref<1x288xf32, #tpu.memory_space<vmem>>, vector<1x32xf32>
    %26 = vector.broadcast %25 : vector<1x32xf32> to vector<8x32xf32>
    %27 = arith.addf %24, %26 : vector<8x32xf32>
    %28 = vector.extract_strided_slice %27 {offsets = [0, 0], sizes = [8, 8], strides = [1, 1]} : vector<8x32xf32> to vector<8x8xf32>
    %cst_21 = arith.constant dense<0xFF800000> : vector<8xf32>
    %29 = vector.multi_reduction <maximumf>, %28, %cst_21 [1] : vector<8x8xf32> to vector<8xf32>
    %30 = vector.shape_cast %29 : vector<8xf32> to vector<8x1xf32>
    %31 = vector.extract_strided_slice %27 {offsets = [0, 8], sizes = [8, 8], strides = [1, 1]} : vector<8x32xf32> to vector<8x8xf32>
    %cst_22 = arith.constant dense<0xFF800000> : vector<8xf32>
    %32 = vector.multi_reduction <maximumf>, %31, %cst_22 [1] : vector<8x8xf32> to vector<8xf32>
    %33 = vector.shape_cast %32 : vector<8xf32> to vector<8x1xf32>
    %34 = vector.extract_strided_slice %27 {offsets = [0, 16], sizes = [8, 8], strides = [1, 1]} : vector<8x32xf32> to vector<8x8xf32>
    %cst_23 = arith.constant dense<0xFF800000> : vector<8xf32>
    %35 = vector.multi_reduction <maximumf>, %34, %cst_23 [1] : vector<8x8xf32> to vector<8xf32>
    %36 = vector.shape_cast %35 : vector<8xf32> to vector<8x1xf32>
    %37 = vector.extract_strided_slice %27 {offsets = [0, 24], sizes = [8, 8], strides = [1, 1]} : vector<8x32xf32> to vector<8x8xf32>
    %cst_24 = arith.constant dense<0xFF800000> : vector<8xf32>
    %38 = vector.multi_reduction <maximumf>, %37, %cst_24 [1] : vector<8x8xf32> to vector<8xf32>
    %39 = vector.shape_cast %38 : vector<8xf32> to vector<8x1xf32>
    %40 = tpu.concatenate %30, %33, %36, %39 in 1 : vector<8x1xf32>, vector<8x1xf32>, vector<8x1xf32>, vector<8x1xf32> -> vector<8x4xf32>
    %c0_25 = arith.constant 0 : index
    %c128_26 = arith.constant 128 : index
    %41 = vector.load %arg6[%c0_25, %c128_26] : memref<4x160xf32, #tpu.memory_space<vmem>>, vector<4x32xf32>
    %cst_27 = arith.constant dense<0.000000e+00> : vector<8x32xf32>
    %42 = tpu.matmul %40, %41, %cst_27 {dimension_numbers = #tpu.dot_dimension_numbers<[1], [0], [0], [1], [0, 0, 1, 1], [], []>} : vector<8x4xf32>, vector<4x32xf32>, vector<8x32xf32> -> vector<8x32xf32>
    %43 = arith.subf %27, %42 : vector<8x32xf32>
    %44 = math.exp %43 : vector<8x32xf32>
    %45 = vector.extract_strided_slice %44 {offsets = [0, 0], sizes = [8, 8], strides = [1, 1]} : vector<8x32xf32> to vector<8x8xf32>
    %cst_28 = arith.constant dense<0.000000e+00> : vector<8xf32>
    %46 = vector.multi_reduction <add>, %45, %cst_28 [1] : vector<8x8xf32> to vector<8xf32>
    %47 = vector.shape_cast %46 : vector<8xf32> to vector<8x1xf32>
    %48 = vector.extract_strided_slice %44 {offsets = [0, 8], sizes = [8, 8], strides = [1, 1]} : vector<8x32xf32> to vector<8x8xf32>
    %cst_29 = arith.constant dense<0.000000e+00> : vector<8xf32>
    %49 = vector.multi_reduction <add>, %48, %cst_29 [1] : vector<8x8xf32> to vector<8xf32>
    %50 = vector.shape_cast %49 : vector<8xf32> to vector<8x1xf32>
    %51 = vector.extract_strided_slice %44 {offsets = [0, 16], sizes = [8, 8], strides = [1, 1]} : vector<8x32xf32> to vector<8x8xf32>
    %cst_30 = arith.constant dense<0.000000e+00> : vector<8xf32>
    %52 = vector.multi_reduction <add>, %51, %cst_30 [1] : vector<8x8xf32> to vector<8xf32>
    %53 = vector.shape_cast %52 : vector<8xf32> to vector<8x1xf32>
    %54 = vector.extract_strided_slice %44 {offsets = [0, 24], sizes = [8, 8], strides = [1, 1]} : vector<8x32xf32> to vector<8x8xf32>
    %cst_31 = arith.constant dense<0.000000e+00> : vector<8xf32>
    %55 = vector.multi_reduction <add>, %54, %cst_31 [1] : vector<8x8xf32> to vector<8xf32>
    %56 = vector.shape_cast %55 : vector<8xf32> to vector<8x1xf32>
    %57 = tpu.concatenate %47, %50, %53, %56 in 1 : vector<8x1xf32>, vector<8x1xf32>, vector<8x1xf32>, vector<8x1xf32> -> vector<8x4xf32>
    %58 = arith.divf %22, %57 : vector<8x4xf32>
    %cst_32 = arith.constant dense<0.000000e+00> : vector<8x32xf32>
    %59 = tpu.matmul %58, %41, %cst_32 {dimension_numbers = #tpu.dot_dimension_numbers<[1], [0], [0], [1], [0, 0, 1, 1], [], []>} : vector<8x4xf32>, vector<4x32xf32>, vector<8x32xf32> -> vector<8x32xf32>
    %60 = arith.mulf %44, %59 : vector<8x32xf32>
    %c0_33 = arith.constant 0 : index
    %c0_34 = arith.constant 0 : index
    %61 = vector.load %arg6[%c0_33, %c0_34] : memref<4x160xf32, #tpu.memory_space<vmem>>, vector<4x64xf32>
    %cst_35 = arith.constant dense<0.000000e+00> : vector<8x64xf32>
    %62 = tpu.matmul %22, %61, %cst_35 {dimension_numbers = #tpu.dot_dimension_numbers<[1], [0], [0], [1], [0, 0, 1, 1], [], []>} : vector<8x4xf32>, vector<4x64xf32>, vector<8x64xf32> -> vector<8x64xf32>
    %63 = arith.mulf %21, %62 : vector<8x64xf32>
    %c0_36 = arith.constant 0 : index
    %c128_37 = arith.constant 128 : index
    %64 = vector.load %arg5[%c0_36, %c128_37] : memref<64x144xf32, #tpu.memory_space<vmem>>, vector<64x16xf32>
    %cst_38 = arith.constant dense<0.000000e+00> : vector<8x16xf32>
    %65 = tpu.matmul %63, %64, %cst_38 {dimension_numbers = #tpu.dot_dimension_numbers<[1], [0], [0], [1], [0, 0, 1, 1], [], []>} : vector<8x64xf32>, vector<64x16xf32>, vector<8x16xf32> -> vector<8x16xf32>
    %c0_39 = arith.constant 0 : index
    %c0_40 = arith.constant 0 : index
    %66 = vector.load %arg7[%c0_39, %c0_40] : memref<32x32xf32, #tpu.memory_space<vmem>>, vector<32x32xf32>
    %cst_41 = arith.constant dense<0.000000e+00> : vector<8x32xf32>
    %67 = tpu.matmul %60, %66, %cst_41 {dimension_numbers = #tpu.dot_dimension_numbers<[1], [0], [0], [1], [0, 0, 1, 1], [], []>} : vector<8x32xf32>, vector<32x32xf32>, vector<8x32xf32> -> vector<8x32xf32>
    %68 = vector.extract_strided_slice %67 {offsets = [0, 0], sizes = [8, 8], strides = [1, 1]} : vector<8x32xf32> to vector<8x8xf32>
    %69 = vector.extract_strided_slice %67 {offsets = [0, 8], sizes = [8, 24], strides = [1, 1]} : vector<8x32xf32> to vector<8x24xf32>
    %c0_42 = arith.constant 0 : index
    %c128_43 = arith.constant 128 : index
    %70 = vector.load %arg9[%c0_42, %c128_43] : memref<8x256xf32, #tpu.memory_space<vmem>>, vector<8x16xf32>
    tpu.vector_store %arg9[%c0_42, %c128_43], %65 {strides = array<i32>} : memref<8x256xf32, #tpu.memory_space<vmem>>, vector<8x16xf32>,
    %71 = math.log %68 : vector<8x8xf32>
    %c0_44 = arith.constant 0 : index
    %c144 = arith.constant 144 : index
    %72 = vector.load %arg9[%c0_44, %c144] : memref<8x256xf32, #tpu.memory_space<vmem>>, vector<8x8xf32>
    tpu.vector_store %arg9[%c0_44, %c144], %71 {strides = array<i32>} : memref<8x256xf32, #tpu.memory_space<vmem>>, vector<8x8xf32>,
    %c0_45 = arith.constant 0 : index
    %c152 = arith.constant 152 : index
    %73 = vector.load %arg9[%c0_45, %c152] : memref<8x256xf32, #tpu.memory_space<vmem>>, vector<8x24xf32>
    tpu.vector_store %arg9[%c0_45, %c152], %69 {strides = array<i32>} : memref<8x256xf32, #tpu.memory_space<vmem>>, vector<8x24xf32>,
    %cst_46 = arith.constant 0.000000e+00 : f32
    %74 = vector.broadcast %cst_46 : f32 to vector<8x80xf32>
    %c0_47 = arith.constant 0 : index
    %c176 = arith.constant 176 : index
    %75 = vector.load %arg9[%c0_47, %c176] : memref<8x256xf32, #tpu.memory_space<vmem>>, vector<8x80xf32>
    tpu.vector_store %arg9[%c0_47, %c176], %74 {strides = array<i32>} : memref<8x256xf32, #tpu.memory_space<vmem>>, vector<8x80xf32>,
    return
  }
  func.func @transform_0(%arg0: i32) -> (i32, i32) {
    %c0_i32 = arith.constant 0 : i32
    %c0_i32_0 = arith.constant 0 : i32
    return %arg0, %c0_i32 : i32, i32
  }
  func.func @transform_1(%arg0: i32) -> (i32, i32) {
    %c0_i32 = arith.constant 0 : i32
    %c0_i32_0 = arith.constant 0 : i32
    return %arg0, %c0_i32 : i32, i32
  }
  func.func @transform_2(%arg0: i32) -> (i32, i32) {
    %c0_i32 = arith.constant 0 : i32
    %c0_i32_0 = arith.constant 0 : i32
    return %arg0, %c0_i32 : i32, i32
  }
  func.func @transform_3(%arg0: i32) -> (i32, i32) {
    %c0_i32 = arith.constant 0 : i32
    %c0_i32_0 = arith.constant 0 : i32
    %c0_i32_1 = arith.constant 0 : i32
    return %c0_i32, %c0_i32_0 : i32, i32
  }
  func.func @transform_4(%arg0: i32) -> (i32, i32) {
    %c0_i32 = arith.constant 0 : i32
    %c0_i32_0 = arith.constant 0 : i32
    %c0_i32_1 = arith.constant 0 : i32
    return %c0_i32, %c0_i32_0 : i32, i32
  }
  func.func @transform_5(%arg0: i32) -> (i32, i32) {
    %c0_i32 = arith.constant 0 : i32
    %c0_i32_0 = arith.constant 0 : i32
    %c0_i32_1 = arith.constant 0 : i32
    return %c0_i32, %c0_i32_0 : i32, i32
  }
  func.func @transform_6(%arg0: i32) -> (i32, i32) {
    %c0_i32 = arith.constant 0 : i32
    %c0_i32_0 = arith.constant 0 : i32
    %c0_i32_1 = arith.constant 0 : i32
    return %c0_i32, %c0_i32_0 : i32, i32
  }
  func.func @transform_7(%arg0: i32) -> (i32, i32) {
    %c0_i32 = arith.constant 0 : i32
    %c0_i32_0 = arith.constant 0 : i32
    %c0_i32_1 = arith.constant 0 : i32
    return %c0_i32, %c0_i32_0 : i32, i32
  }
  func.func @transform_8(%arg0: i32) -> (i32, i32) {
    %c0_i32 = arith.constant 0 : i32
    %c0_i32_0 = arith.constant 0 : i32
    return %arg0, %c0_i32 : i32, i32
  }
}

</mosaic_0001>

<bundles_post_ra>
// kernel: tpu_custom_call.1
= control target key start
LH: loop header
LB: loop body
LE: loop exit
PB: predicated region body
PF: predicated region fallthrough
CT: control target
= control target key end

     0   :  { %13 = vsyncpa [#allocation3], 0  ;;  %s1416_s0 = inlined_call_operand.hbm [shape: f32[8,32], index: 0, kind: input, shape index: {}]   ;;  %s1417_s1 = inlined_call_operand.hbm [shape: f32[8,64], index: 1, kind: input, shape index: {}]   ;;  %s1418_s2 = inlined_call_operand.vmem [shape: f32[8,4], index: 2, kind: input, shape index: {}]   ;;  %s1419_s3 = inlined_call_operand.hbm [shape: f32[32,256], index: 3, kind: input, shape index: {}]   ;;  %s1420_s4 = inlined_call_operand.hbm [shape: f32[64,144], index: 4, kind: input, shape index: {}]   ;;  %s1421_s5 = inlined_call_operand.hbm [shape: f32[4,160], index: 5, kind: input, shape index: {}]   ;;  %s1422_s6 = inlined_call_operand.vmem [shape: f32[32,32], index: 6, kind: input, shape index: {}]   ;;  %s1423_s7 = inlined_call_operand.vmem [shape: f32[1,288], index: 7, kind: input, shape index: {}]   ;;  %s1424_s8 = inlined_call_operand.hbm [shape: f32[8,256], index: 8, kind: output, shape index: {}]  }
   0x1   :  { %14 = vsyncpa [#allocation6], 0 }
   0x2   :  { %15 = vsyncpa [#allocation9], 0 }
   0x3   :  { %16 = vsyncpa [#allocation4], 0  ;;  %s1183_s27 = smov [#allocation5]   ;;  %s1043_s9 = scalar_lea.hbm %s1417_s1, 128 }
   0x4   :  { %s33_s28 = sshll.u32 %s1183_s27, 4  ;;  %p1044_p0 = scmp.ne.s32.totalorder %s1417_s1, %s1043_s9  ;;  %s34_s28 = int_to_ptr.vmem [resolvable:$true] %s33_s28 }
   0x5   :  { %p1047_p1 = scmp.lt.u32.totalorder %s1043_s9, %s1417_s1 }
   0x7   :  { %p1049_p2 = pnand %p1047_p1, %p1044_p0 }
   0x9   :  { %1052 = shalt.err (!%p1049_p2)
}
   0xa   :  { %s1053_s14 = scalar_lea.vmem %s34_s28, 128  ;;  %p1058_p4 = scmp.lt.s32.totalorder %s34_s28, %s34_s28 }
   0xb   :  { %p1054_p3 = scmp.ne.s32.totalorder %s34_s28, %s1053_s14  ;;  %p1059_p5 = scmp.lt.s32.totalorder %s1053_s14, %s1053_s14 }
   0xd   :  { %p1060_p6 = por %p1059_p5, %p1058_p4 }
   0xf   :  { %p1061_p7 = pnand %p1060_p6, %p1054_p3 }
  0x11   :  { %1064 = shalt.err (!%p1061_p7)
}
  0x12   :  { %36 = dma.hbm_to_vmem [thread:$0]  %s1417_s1, 128, %s34_s28, [#allocation6]  }
  0x13   :  { %s1184_s17 = smov [#allocation8]   ;;  %s1185_s19 = smov [#allocation2]  }
  0x14   :  { %s56_s18 = sshll.u32 %s1184_s17, 4  ;;  %s23_s20 = sshll.u32 %s1185_s19, 4  ;;  %s57_s18 = int_to_ptr.vmem [resolvable:$true] %s56_s18  ;;  %s24_s20 = int_to_ptr.vmem [resolvable:$true] %s23_s20 }
  0x15   :  { %s1065_s23 = scalar_lea.hbm %s1420_s4, 2048 }
  0x16   :  { %p1066_p8 = scmp.ne.s32.totalorder %s1420_s4, %s1065_s23  ;;  %p1069_p9 = scmp.lt.u32.totalorder %s1065_s23, %s1420_s4 }
  0x18   :  { %p1071_p10 = pnand %p1069_p9, %p1066_p8 }
  0x1a   :  { %1074 = shalt.err (!%p1071_p10)
}
  0x1b   :  { %s1075_s1 = scalar_lea.vmem %s57_s18, 2048  ;;  %p1080_p12 = scmp.lt.s32.totalorder %s57_s18, %s57_s18 }
  0x1c   :  { %p1076_p11 = scmp.ne.s32.totalorder %s57_s18, %s1075_s1  ;;  %p1081_p13 = scmp.lt.s32.totalorder %s1075_s1, %s1075_s1 }
  0x1e   :  { %p1082_p0 = por %p1081_p13, %p1080_p12 }
  0x20   :  { %p1083_p1 = pnand %p1082_p0, %p1076_p11 }
  0x22   :  { %1086 = shalt.err (!%p1083_p1)
}
  0x23   :  { %s1186_s28 = smov 256   ;;  %s1187_s29 = smov 16  }
  0x24   :  { %62 = dma.hbm_to_vmem [thread:$0]  %s1420_s4, 2048, %s57_s18, [#allocation9], %s1186_s28, %s1186_s28, %s1187_s29  }
  0x25   :  { %s1087_s12 = scalar_lea.hbm %s1416_s0, 128 }
  0x26   :  { %p1088_p2 = scmp.ne.s32.totalorder %s1416_s0, %s1087_s12  ;;  %p1091_p3 = scmp.lt.u32.totalorder %s1087_s12, %s1416_s0 }
  0x28   :  { %p1093_p4 = pnand %p1091_p3, %p1088_p2 }
  0x2a   :  { %1096 = shalt.err (!%p1093_p4)
}
  0x2b   :  { %s1097_s17 = scalar_lea.vmem %s24_s20, 128  ;;  %p1102_p6 = scmp.lt.s32.totalorder %s24_s20, %s24_s20 }
  0x2c   :  { %p1098_p5 = scmp.ne.s32.totalorder %s24_s20, %s1097_s17  ;;  %p1103_p7 = scmp.lt.s32.totalorder %s1097_s17, %s1097_s17 }
  0x2e   :  { %p1104_p8 = por %p1103_p7, %p1102_p6 }
  0x30   :  { %p1105_p9 = pnand %p1104_p8, %p1098_p5 }
  0x32   :  { %1108 = shalt.err (!%p1105_p9)
}
  0x33   :  { %26 = dma.hbm_to_vmem [thread:$0]  %s1416_s0, 128, %s24_s20, [#allocation3]  }
  0x34   :  { %s1188_s19 = smov [#allocation7]   ;;  %s1189_s22 = smov [#allocation10]  }
  0x35   :  { %s44_s21 = sshll.u32 %s1188_s19, 4  ;;  %s69_s23 = sshll.u32 %s1189_s22, 4  ;;  %s45_s21 = int_to_ptr.vmem [resolvable:$true] %s44_s21  ;;  %s70_s23 = int_to_ptr.vmem [resolvable:$true] %s69_s23 }
  0x36   :  { %s1109_s26 = scalar_lea.hbm %s1419_s3, 1024 }
  0x37   :  { %p1110_p10 = scmp.ne.s32.totalorder %s1419_s3, %s1109_s26  ;;  %p1113_p11 = scmp.lt.u32.totalorder %s1109_s26, %s1419_s3 }
  0x39   :  { %p1115_p12 = pnand %p1113_p11, %p1110_p10 }
  0x3b   :  { %1118 = shalt.err (!%p1115_p12)
}
  0x3c   :  { %s1119_s0 = scalar_lea.vmem %s45_s21, 1024  ;;  %p1124_p0 = scmp.lt.s32.totalorder %s45_s21, %s45_s21 }
  0x3d   :  { %p1120_p13 = scmp.ne.s32.totalorder %s45_s21, %s1119_s0  ;;  %p1125_p1 = scmp.lt.s32.totalorder %s1119_s0, %s1119_s0 }
  0x3f   :  { %p1126_p2 = por %p1125_p1, %p1124_p0 }
  0x41   :  { %p1127_p3 = pnand %p1126_p2, %p1120_p13 }
  0x43   :  { %1130 = shalt.err (!%p1127_p3)
}
  0x44   :  { %50 = dma.hbm_to_vmem [thread:$0]  %s1419_s3, 1024, %s45_s21, [#allocation6], %s1186_s28, %s1186_s28, %s1187_s29  }
  0x45   :  { %s1131_s13 = scalar_lea.hbm %s1421_s5, 128 }
  0x46   :  { %p1132_p4 = scmp.ne.s32.totalorder %s1421_s5, %s1131_s13  ;;  %p1135_p5 = scmp.lt.u32.totalorder %s1131_s13, %s1421_s5 }
  0x48   :  { %p1137_p6 = pnand %p1135_p5, %p1132_p4 }
  0x4a   :  { %1140 = shalt.err (!%p1137_p6)
}
  0x4b   :  { %s1141_s4 = scalar_lea.vmem %s70_s23, 128  ;;  %p1146_p8 = scmp.lt.s32.totalorder %s70_s23, %s70_s23 }
  0x4c   :  { %p1142_p7 = scmp.ne.s32.totalorder %s70_s23, %s1141_s4  ;;  %p1147_p9 = scmp.lt.s32.totalorder %s1141_s4, %s1141_s4 }
  0x4e   :  { %p1148_p10 = por %p1147_p9, %p1146_p8 }
  0x50   :  { %p1149_p11 = pnand %p1148_p10, %p1142_p7 }
  0x52   :  { %1152 = shalt.err (!%p1149_p11)
}
  0x53   :  { %72 = dma.hbm_to_vmem [thread:$0]  %s1421_s5, 128, %s70_s23, [#allocation9]  }
  0x54   :  { %1175 = dma.done.wait [#allocation3], 128  }
  0x55   :  { %1176 = vsyncadd [#allocation3], 4294967168 }
  0x56   :  { %1177 = dma.done.wait [#allocation6], 1152  }
  0x57   :  { %1178 = vsyncadd [#allocation6], 4294966144 }
  0x58   :  { %1179 = dma.done.wait [#allocation9], 2176  }
  0x59   :  { %1180 = vsyncadd [#allocation9], 4294965120  ;;  %v1190_v0 = vmov 0.0|0.0   ;;  %vm1191_vm0 = vmmov 0   ;;  %v1192_v1 = vmov 0.0   ;;  %v93_v2 = vld [vmem:[#allocation7] sm:$0xff] }
  0x5a   :  { %978 = vmatprep.subr.bf16.mxu0 %v1190_v0  ;;  %900 = vmatprep.mubr.msk.f32.mxu0 %vm1191_vm0, %v1192_v1  ;;  %v94_v3 = vld [vmem:[#allocation7 + $0x10] sm:$0xff]  ;;  %v95_v4 = vld [vmem:[#allocation7 + $0x20] sm:$0xff]  ;;  %v179_v7 = vld [vmem:[#allocation7 + $0x8] sm:$0xff]  ;;  %vm104_vm1 = vcmask 261120   ;;  %s1193_s22 = smov 64   ;;  %vm290_vm2 = vcmask 523264  }
  0x5b   :  { %984 = vmatprep.subr.bf16.mxu1 %v1190_v0  ;;  %911 = vmatprep.mubr.msk.f32.mxu1 %vm1191_vm0, %v1192_v1  ;;  %v979_v5 = vpack.c.bf16 %v94_v3, %v93_v2  ;;  %v96_v6 = vld [vmem:[#allocation7 + $0x30] sm:$0xff]  ;;  %v180_v8 = vld [vmem:[#allocation7 + $0x18] sm:$0xff]  ;;  %v181_v12 = vld [vmem:[#allocation7 + $0x28] sm:$0xff]  ;;  %vm368_vm3 = vcmask 130112   ;;  %vm364_vm4 = vcmask 64512   ;;  %vm372_vm5 = vcmask 195712  }
  0x5c   :  { %v982_v9 = vpack.c.bf16 %v96_v6, %v95_v4  ;;  %v985_v10 = vpack.c.bf16 %v180_v8, %v179_v7  ;;  %v92_v11 = vld [vmem:[#allocation2] sm:$0xff]  ;;  %v182_v13 = vld [vmem:[#allocation7 + $0x38] sm:$0xff]  ;;  %v275_v20 = vld [vmem:[#allocation8] sm:$0xff]  ;;  %vm376_vm6 = vcmask 261312   ;;  %vm391_vm7 = vcmask 1043456   ;;  %s1195_s25 = smov 112  }
  0x5d   :  { %980 = vmatpush3.bf16.msra.mxu0 %v979_v5  ;;  %v988_v14 = vpack.c.bf16 %v182_v13, %v181_v12  ;;  %v839_v15 = vld [vmem:[%s1423_s7] ss:$0 sm:$0xff]  ;;  %v277_v22 = vld [vmem:[#allocation8 + $0x20] sm:$0xff]  ;;  %v841_v29 = vld [vmem:[%s1423_s7 + $0x1] ss:$0 sm:$0xff]  ;;  %vm380_vm8 = vcmask 7168  }
  0x5e   :  { %981 = vmatprep.subr.bf16.mxu0 %v1190_v0  ;;  %986 = vmatpush3.bf16.msra.mxu1 %v985_v10  ;;  %v276_v21 = vld [vmem:[#allocation8 + $0x10] sm:$0xff]  ;;  %v279_v26 = vld [vmem:[#allocation8 + $0x40] sm:$0xff]  ;;  %v264_v39 = vld [vmem:[#allocation5] sm:$0xff]  ;;  %vm382_vm9 = vcmask 15360   ;;  %vm384_vm10 = vcmask 23552   ;;  %vm387_vm11 = vcmask 31744  }
  0x5f   :  { %987 = vmatprep.subr.bf16.mxu1 %v1190_v0  ;;  %v991_v23 = vpack.c.bf16 %v276_v21, %v275_v20  ;;  %v278_v24 = vld [vmem:[#allocation8 + $0x30] sm:$0xff]  ;;  %v281_v34 = vld [vmem:[#allocation8 + $0x60] sm:$0xff]  ;;  %s1196_s26 = smov 104   ;;  %v729_v10 = vld [vmem:[%s1422_s6 + $0x8] sm:$0xff]  ;;  %vm805_vm12 = vcmask 130048   ;;  %vm818_vm13 = vcmask 392384  }
  0x60   :  { %v994_v25 = vpack.c.bf16 %v278_v24, %v277_v22  ;;  %v280_v27 = vld [vmem:[#allocation8 + $0x50] sm:$0xff]  ;;  %v386_v51 = vld [vmem:[#allocation10 + $0x4] sm:$0xf]  ;;  %v569_v22 = vld [vmem:[#allocation10] sm:$0xf]  ;;  %vm820_vm14 = vcmask 1047936  }
  0x61   :  { %983 = vmatpush3.bf16.msra.mxu0 %v982_v9  ;;  %v997_v28 = vpack.c.bf16 %v280_v27, %v279_v26  ;;  %v282_v35 = vld [vmem:[#allocation8 + $0x70] sm:$0xff]  ;;  %v648_v24 = vld [vmem:[#allocation8 + $0x18] sm:$0xff]  ;;  %v649_v26 = vld [vmem:[#allocation8 + $0x28] sm:$0xff] }
  0x62   :  { %990 = vmatprep.subr.bf16.mxu0 %v1190_v0  ;;  %989 = vmatpush3.bf16.msra.mxu1 %v988_v14  ;;  %v1000_v36 = vpack.c.bf16 %v282_v35, %v281_v34  ;;  %v843_v43 = vld [vmem:[%s1423_s7 + $0x2] ss:$0 sm:$0xff]  ;;  %s1194_s7 = smov 120   ;;  %v650_v27 = vld [vmem:[#allocation8 + $0x38] sm:$0xff]  ;;  %v653_v35 = vld [vmem:[#allocation8 + $0x68] sm:$0xff] }
  0x63   :  { %933 = vmatprep.subr.mxu1 %v1192_v1  ;;  %v728_v9 = vld [vmem:[%s1422_s6] sm:$0xff] }
  0x64   :  { %901 = vmatmul.mubr.msk.f32.vlgmr.msra.gmra.mrb[0].mxu0 %vm104_vm1, %v92_v11  ;;  %v1015_v11 = vpack.c.bf16 %v729_v10, %v728_v9 }
  0x65   :  { %930 = vmatprep.mubr.msk.f32.mxu0 %vm1191_vm0, %v1192_v1  ;;  %992 = vmatpush3.bf16.msra.mxu0 %v991_v23  ;;  %v647_v23 = vld [vmem:[#allocation8 + $0x8] sm:$0xff] }
  0x66   :  { %993 = vmatprep.subr.bf16.mxu0 %v1190_v0 }
  0x69   :  { %995 = vmatpush3.bf16.msra.mxu0 %v994_v25  ;;  %v1003_v25 = vpack.c.bf16 %v648_v24, %v647_v23 }
  0x6a   :  { %996 = vmatprep.subr.bf16.mxu0 %v1190_v0 }
  0x6d   :  { %998 = vmatpush3.bf16.msra.mxu0 %v997_v28  ;;  %v1006_v28 = vpack.c.bf16 %v650_v27, %v649_v26 }
  0x6e   :  { %999 = vmatprep.subr.bf16.mxu0 %v1190_v0 }
  0x71   :  { %1001 = vmatpush3.bf16.msra.mxu0 %v1000_v36  ;;  %v654_v36 = vld [vmem:[#allocation8 + $0x78] sm:$0xff] }
  0x72   :  { %1014 = vmatprep.subr.bf16.mxu0 %v1190_v0 }
 0x137   :  { %v174_v16 = vpop.f32.mrb[0].mxu0 }
 0x138   :  { %v175_v17 = vadd.f32 %v839_v15, %v174_v16  ;;  %v902_v18 = vpop.f32.mrb[1].mxu0 }
 0x13a   :  { %v178_v19 = vmax.f32 %v175_v17, 0.0 }
 0x13c   :  { %912 = vmatmul.mubr.msk.f32.vlgmr.msra.gmra.mrb[0].mxu1 %vm104_vm1, %v178_v19  ;;  %v274_v19 = vld [vmem:[%s1418_s2] sm:$0xff] }
 0x13d   :  { %935 = vmatprep.mubr.msk.f32.mxu1 %vm1191_vm0, %v1192_v1  ;;  %934 = vmatpush3.msk.msra.mxu1 %vm391_vm7, %v386_v51 }
 0x13e   :  { %938 = vmatprep.subr.mxu1 %v1192_v1 }
 0x20f   :  { %v259_v30 = vpop.f32.mrb[0].mxu1 }
 0x210   :  { %v260_v31 = vadd.f32 %v841_v29, %v259_v30  ;;  %v913_v32 = vpop.f32.mrb[1].mxu1  ;;  %v651_v29 = vld [vmem:[#allocation8 + $0x48] sm:$0xff]  ;;  %v652_v30 = vld [vmem:[#allocation8 + $0x58] sm:$0xff] }
 0x211   :  { %v1009_v32 = vpack.c.bf16 %v652_v30, %v651_v29 }
 0x212   :  { %v265_v33 = vmul.f32 0.5, %v260_v31  ;;  %263 = vst [vmem:[#allocation11] sm:$0xff] %v260_v31 }
 0x214   :  { %v266_v37 = vmul.f32 1.442695, %v265_v33  ;;  %v731_v33 = vld [vmem:[%s1422_s6 + $0x18] sm:$0xff] }
 0x216   :  { %1035 = vpow2.f32 %v266_v37  ;;  %v1012_v37 = vpack.c.bf16 %v654_v36, %v653_v35 }
 0x220   :  { %v1036_v38 = vpop.eup %1035 }
 0x221   :  { %269 = vrot.lane.b32.xlu0 %v1036_v38, %s1193_s22 }
 0x293   :  { %v270_v40 = vpop.permute.xlu0 %269 }
 0x294   :  { %v272_v41 = vmul.f32 %v270_v40, %v264_v39 }
 0x296   :  { %v1335_v42 = vadd.f32 %v272_v41, %v260_v31  ;;  %v730_v31 = vld [vmem:[%s1422_s6 + $0x10] sm:$0xff]  ;;  %s1197_s6 = smov [#allocation11]  }
 0x297   :  { %v1018_v34 = vpack.c.bf16 %v731_v33, %v730_v31  ;;  %s828_s13 = sshll.u32 %s1197_s6, 4  ;;  %s829_s13 = int_to_ptr.vmem [resolvable:$true] %s828_s13 }
 0x298   :  { %931 = vmatmul.mubr.msk.f32.vlgmr.msra.gmra.mrb[2].mxu0 %vm290_vm2, %v1335_v42  ;;  %s1153_s14 = scalar_lea.vmem %s829_s13, 256  ;;  %p1158_p13 = scmp.lt.s32.totalorder %s829_s13, %s829_s13 }
 0x299   :  { %975 = vmatprep.mubr.msk.f32.mxu0 %vm1191_vm0, %v1192_v1  ;;  %1016 = vmatpush3.bf16.msra.mxu0 %v1015_v11  ;;  %p1154_p12 = scmp.ne.s32.totalorder %s829_s13, %s1153_s14  ;;  %p1159_p0 = scmp.lt.s32.totalorder %s1153_s14, %s1153_s14 }
 0x29a   :  { %1017 = vmatprep.subr.bf16.mxu0 %v1190_v0 }
 0x29b   :  { %p1160_p1 = por %p1159_p0, %p1158_p13 }
 0x29d   :  { %1019 = vmatpush3.bf16.msra.mxu0 %v1018_v34  ;;  %p1161_p2 = pnand %p1160_p1, %p1154_p12 }
 0x36b   :  { %v360_v44 = vpop.f32.mrb[2].mxu0 }
 0x36c   :  { %v361_v45 = vadd.f32 %v843_v43, %v360_v44  ;;  %v932_v46 = vpop.f32.mrb[3].mxu0 }
 0x36e   :  { %v369_v47 = vsel %vm368_vm3, %v361_v45, -inf  ;;  %v365_v48 = vsel %vm364_vm4, %v361_v45, -inf  ;;  %v373_v49 = vsel %vm372_vm5, %v361_v45, -inf  ;;  %v377_v50 = vsel %vm376_vm6, %v361_v45, -inf }
 0x36f   :  { %370 = vmax.xlane.f32.xlu1 %v369_v47  ;;  %366 = vmax.xlane.f32.xlu0 %v365_v48 }
 0x373   :  { %374 = vmax.xlane.f32.xlu1 %v373_v49 }
 0x377   :  { %378 = vmax.xlane.f32.xlu1 %v377_v50 }
 0x3fc   :  { %v371_v52 = vpop.xlane.xlu1 %370  ;;  %v367_v53 = vpop.xlane.xlu0 %366 }
 0x3fd   :  { %v381_v55 = vsel %vm380_vm8, %v367_v53, %v371_v52 }
 0x400   :  { %v375_v54 = vpop.xlane.xlu1 %374 }
 0x401   :  { %v383_v56 = vsel %vm382_vm9, %v381_v55, %v375_v54 }
 0x404   :  { %v379_v57 = vpop.xlane.xlu1 %378 }
 0x405   :  { %v385_v58 = vsel %vm384_vm10, %v383_v56, %v379_v57 }
 0x406   :  { %936 = vmatmul.mubr.msk.f32.vlgmr.msra.gmra.mrb[2].mxu1 %vm387_vm11, %v385_v58 }
 0x407   :  { %939 = vmatpush3.msk.msra.mxu1 %vm391_vm7, %v386_v51  ;;  %940 = vmatprep.mubr.msk.f32.mxu1 %vm1191_vm0, %v1192_v1 }
 0x408   :  { %943 = vmatprep.subr.mxu1 %v1192_v1 }
 0x4d9   :  { %v461_v59 = vpop.f32.mrb[2].mxu1 }
 0x4da   :  { %v465_v60 = vsub.f32 %v361_v45, %v461_v59  ;;  %v937_v61 = vpop.f32.mrb[3].mxu1 }
 0x4dc   :  { %v466_v62 = vmul.f32 1.442695, %v465_v60 }
 0x4de   :  { %1037 = vpow2.f32 %v466_v62 }
 0x4e8   :  { %v1356_v63 = vpop.eup %1037 }
 0x4e9   :  { %472 = vrot.lane.b32.xlu1 %v1356_v63, %s1194_s7  ;;  %v468_v2 = vsel %vm364_vm4, %v1356_v63, 0.0 }
 0x4ea   :  { %469 = vadd.xlane.f32.xlu0 %v468_v2 }
 0x4ed   :  { %478 = vrot.lane.b32.xlu1 %v1356_v63, %s1195_s25 }
 0x4f1   :  { %484 = vrot.lane.b32.xlu1 %v1356_v63, %s1196_s26 }
 0x55b   :  { %v473_v3 = vpop.permute.xlu1 %472 }
 0x55c   :  { %v475_v4 = vsel %vm364_vm4, %v473_v3, 0.0 }
 0x55d   :  { %476 = vadd.xlane.f32.xlu1 %v475_v4 }
 0x55f   :  { %v479_v5 = vpop.permute.xlu1 %478 }
 0x560   :  { %v481_v6 = vsel %vm364_vm4, %v479_v5, 0.0 }
 0x561   :  { %482 = vadd.xlane.f32.xlu0 %v481_v6 }
 0x563   :  { %v485_v7 = vpop.permute.xlu1 %484 }
 0x564   :  { %v487_v8 = vsel %vm364_vm4, %v485_v7, 0.0 }
 0x565   :  { %488 = vadd.xlane.f32.xlu0 %v487_v8 }
 0x577   :  { %v470_v12 = vpop.xlane.xlu0 %469 }
 0x5ea   :  { %v477_v13 = vpop.xlane.xlu1 %476 }
 0x5eb   :  { %v490_v15 = vsel %vm380_vm8, %v470_v12, %v477_v13 }
 0x5ee   :  { %v483_v14 = vpop.xlane.xlu0 %482 }
 0x5ef   :  { %v491_v16 = vsel %vm382_vm9, %v490_v15, %v483_v14 }
 0x5f2   :  { %v489_v17 = vpop.xlane.xlu0 %488 }
 0x5f3   :  { %v492_v18 = vsel %vm384_vm10, %v491_v16, %v489_v17 }
 0x5f4   :  { %1039 = vrcp.f32 %v492_v18 }
 0x5fe   :  { %v1040_v20 = vpop.eup %1039 }
 0x5ff   :  { %v494_v21 = vmul.f32 %v1040_v20, %v274_v19 }
 0x601   :  { %941 = vmatmul.mubr.msk.f32.vlgmr.msra.gmra.mrb[4].mxu1 %vm387_vm11, %v494_v21 }
 0x602   :  { %944 = vmatpush3.msk.msra.mxu1 %vm391_vm7, %v569_v22  ;;  %945 = vmatprep.mubr.msk.f32.mxu1 %vm1191_vm0, %v1192_v1 }
 0x603   :  { %1002 = vmatprep.subr.bf16.mxu1 %v1190_v0 }
 0x605   :  { %946 = vmatmul.mubr.msk.f32.vlgmr.msra.gmra.mrb[6].mxu1 %vm387_vm11, %v274_v19 }
 0x606   :  { %1004 = vmatpush3.bf16.msra.mxu1 %v1003_v25  ;;  %964 = vmatprep.mubr.msk.f32.mxu1 %vm1191_vm0, %v1192_v1 }
 0x607   :  { %1005 = vmatprep.subr.bf16.mxu1 %v1190_v0 }
 0x60a   :  { %1007 = vmatpush3.bf16.msra.mxu1 %v1006_v28 }
 0x60b   :  { %1008 = vmatprep.subr.bf16.mxu1 %v1190_v0 }
 0x60e   :  { %1010 = vmatpush3.bf16.msra.mxu1 %v1009_v32 }
 0x60f   :  { %1011 = vmatprep.subr.bf16.mxu1 %v1190_v0 }
 0x612   :  { %1013 = vmatpush3.bf16.msra.mxu1 %v1012_v37 }
 0x6d4   :  { %v564_v38 = vpop.f32.mrb[4].mxu1 }
 0x6d5   :  { %v568_v39 = vmul.f32 %v1356_v63, %v564_v38  ;;  %v942_v40 = vpop.f32.mrb[5].mxu1 }
 0x6d7   :  { %976 = vmatmul.mubr.msk.f32.vlgmr.msra.gmra.mrb[4].mxu0 %vm104_vm1, %v568_v39 }
 0x6d8   :  { %v642_v41 = vpop.f32.mrb[6].mxu1 }
 0x6d9   :  { %v646_v43 = vmul.f32 %v642_v41, %v1335_v42  ;;  %v947_v44 = vpop.f32.mrb[7].mxu1 }
 0x6db   :  { %965 = vmatmul.mubr.msk.f32.vlgmr.msra.gmra.mrb[8].mxu1 %vm290_vm2, %v646_v43 }
 0x7aa   :  { %v801_v45 = vpop.f32.mrb[4].mxu0 }
 0x7ab   :  { %1041 = vlog2.f32 %v801_v45  ;;  %v977_v46 = vpop.f32.mrb[5].mxu0 }
 0x7ae   :  { %v724_v0 = vpop.f32.mrb[8].mxu1 }
 0x7af   :  { %806 = vst.msk [vmem:[#allocation11 + $0x8] sm:$0xff] %vm805_vm12, %v724_v0  ;;  %v966_v47 = vpop.f32.mrb[9].mxu1 }
 0x7b5   :  { %v1042_v48 = vpop.eup %1041 }
 0x7b6   :  { %v808_v49 = vmul.f32 0.6931472, %v1042_v48 }
 0x7b8   :  { %810 = vrot.lane.b32.xlu0 %v808_v49, %s1187_s29 }
 0x7bc   :  { %815 = vrot.lane.b32.xlu0 %v801_v45, %s1187_s29 }
 0x82a   :  { %v811_v50 = vpop.permute.xlu0 %810 }
 0x82b   :  { %813 = vst.msk [vmem:[#allocation11 + $0x8] sm:$0xff] %vm372_vm5, %v811_v50 }
 0x82e   :  { %v816_v42 = vpop.permute.xlu0 %815 }
 0x82f   :  { %819 = vst.msk [vmem:[#allocation11 + $0x8] sm:$0xff] %vm818_vm13, %v816_v42 }
 0x830   :  { %821 = vst.msk [vmem:[#allocation11 + $0x8] sm:$0xff] %vm820_vm14, %v1192_v1 }
 0x831   :  { %1164 = shalt.err (!%p1161_p2)
}
 0x832   :  { %s1165_s16 = scalar_lea.hbm %s1424_s8, 256 }
 0x833   :  { %p1166_p3 = scmp.ne.s32.totalorder %s1424_s8, %s1165_s16  ;;  %p1169_p4 = scmp.lt.u32.totalorder %s1165_s16, %s1424_s8 }
 0x835   :  { %p1171_p5 = pnand %p1169_p4, %p1166_p3 }
 0x837   :  { %1174 = shalt.err (!%p1171_p5)
}
 0x838   :  { %831 = dma.vmem_to_hbm [thread:$0]  %s829_s13, 256, %s1424_s8, [#allocation4]  }
 0x839   :  { %1181 = dma.done.wait [#allocation4], 256  }
 0x83a   :  { %1182 = vsyncadd [#allocation4], 4294967040 }
 0x83b   :  { %835 = vsyncpa [#allocation3], 1 }
 0x83c   :  { %836 = vsyncpa [#allocation6], 1 }
 0x83d   :  { %837 = vsyncpa [#allocation9], 1 }
 0x83e   :  { %838 = vsyncpa [#allocation4], 1 }

</bundles_post_ra>
